<compile_context>
chip_gen: v5e
topology: v5e:2x2
jax: 0.10.0
libtpu: 0.0.40
codegen_flags: <defaults>
</compile_context>

<pallas_src>
import jax
import jax.numpy as jnp
from jax.experimental import pallas as pl
from jax.experimental.pallas import tpu as pltpu


def _attention_kernel(hidden_ref, enc_ref, mask_ref, wh_ref, we_ref, b_ref,
                      v_ref, out_ref, hb_ref, raw_ref):
    """One (batch-tile i, src-tile j) grid step.

    hidden_ref: (tb, D)       matmul dtype
    enc_ref:    (ts, tb, E2)  matmul dtype  (native seq-major layout)
    mask_ref:   (tb, S)       f32
    wh_ref:     (D, D)  we_ref: (E2, D)     matmul dtype
    b_ref, v_ref: (1, D)      f32
    out_ref:    (tb, S)       f32 (resident across j)
    hb_ref:     (tb, D)       f32 scratch: hidden proj + bias (S-invariant)
    raw_ref:    (S, tb)       f32 scratch: raw scores, S on the sublane axis
    """
    j = pl.program_id(1)                     # src_len tile index (last grid axis)
    ns = pl.num_programs(1)
    ts, tb, e2 = enc_ref.shape
    d = wh_ref.shape[1]

    # Hidden projection + bias: invariant along S -> compute once per batch tile.
    @pl.when(j == 0)
    def _():
        hb_ref[...] = (
            jnp.dot(hidden_ref[...], wh_ref[...],
                    preferred_element_type=jnp.float32)
            + b_ref[...].astype(jnp.float32))                     # (tb, D)

    # Encoder projection as one big 2-D MXU matmul (f32 accumulation).
    enc = enc_ref[...]                                            # (ts, tb, E2)
    e_proj = jnp.dot(enc.reshape(ts * tb, e2), we_ref[...],
                     preferred_element_type=jnp.float32)          # (ts*tb, D)
    e_proj = e_proj.reshape(ts, tb, d)                            # (ts, tb, D)

    # tanh / v-dot kept in f32 (safe on v5e: no bf16 VPU/EUP path).
    energy = jnp.tanh(e_proj + hb_ref[...][None, :, :])           # (ts, tb, D)
    scores = jnp.sum(energy * v_ref[...].astype(jnp.float32), axis=-1)  # (ts, tb)

    # Stash raw scores for this S tile (dynamic offset on the sublane axis).
    off = pl.multiple_of(j * ts, ts)
    raw_ref[pl.ds(off, ts), :] = scores

    # Last S tile: mask + softmax over the full row, one lane-dense (tb,S) store.
    @pl.when(j == ns - 1)
    def _():
        s = raw_ref[...].T                                        # (tb, S)
        s = jnp.where(mask_ref[...] == 0, jnp.float32(-1e10), s)
        m = jnp.max(s, axis=1, keepdims=True)
        e = jnp.exp(s - m)
        out_ref[...] = e / jnp.sum(e, axis=1, keepdims=True)


def _pick_tile(total, target, align):
    """Largest multiple of `align` that divides `total` and is <= target,
    falling back to the full extent (always a legal block shape)."""
    if total <= target:
        return total
    t = (min(target, total) // align) * align
    while t >= align:
        if total % t == 0:
            return t
        t -= align
    return total


def _vmem_capacity_bytes():
    try:
        return int(pltpu.get_tpu_info().vmem_capacity_bytes)
    except Exception:
        return 64 << 20          # conservative default (v7x per-core VMEM)


def _attention_pallas(hidden, encoder_outputs, mask, w_attn, b_attn, w_v,
                      matmul_dtype):
    S, B, E2 = encoder_outputs.shape
    D = hidden.shape[1]

    # ---- dtype / batch-tile selection --------------------------------------
    isz = jnp.dtype(matmul_dtype).itemsize
    align_b = 16 if isz < 4 else 8                 # sublane pack of matmul dtype
    tb = _pick_tile(B, min(32, max(align_b, B // 2)), align_b)
    if isz < 4 and tb % 16 != 0:
        # Can't keep the encoder block's sublane dim aligned to the bf16 pack:
        # fall back to f32 (tiny/odd batches -> bf16 HBM savings are irrelevant).
        matmul_dtype = jnp.float32
        isz = 4
        tb = _pick_tile(B, min(32, max(8, B // 2)), 8)
    nb = B // tb

    # ---- src-len tile from the per-generation VMEM budget ------------------
    vmem_cap = _vmem_capacity_bytes()
    fixed = (4 * tb * S * 4                          # out + mask blocks (2x buffered)
             + 2 * tb * D * isz                      # hidden block
             + 2 * ((D + E2) * D * isz + 2 * D * 4)  # weights + bias + v
             + (tb * D + S * tb) * 4)                # scratch (hb + raw scores)
    per_ts = tb * (3 * E2 * isz + 5 * D * 4)         # enc block (2x) + f32 temps
    budget = max(int(0.5 * vmem_cap) - fixed, per_ts * 128)
    max_ts = max(128, min(budget // per_ts, (8 << 20) // (tb * D * 4)))
    ts = _pick_tile(S, min(S, max_ts), 128)
    ns = S // ts

    est = fixed + per_ts * ts
    vmem_limit = int(min(max(int(est * 1.3), 32 << 20), int(0.85 * vmem_cap)))

    # ---- operands -----------------------------------------------------------
    # Split the concat weight:  cat(hidden, enc) @ W.T == hidden @ Wh + enc @ We
    w_t = w_attn.T.astype(matmul_dtype)              # (D + E2, D)
    wh = w_t[:D, :]                                  # (D, D)  multiplies hidden
    we = w_t[D:, :]                                  # (E2, D) multiplies encoder
    b2 = b_attn.reshape(1, D).astype(jnp.float32)
    v_row = w_v.reshape(1, D).astype(jnp.float32)

    hidden_c = hidden.astype(matmul_dtype)
    enc_c = encoder_outputs.astype(matmul_dtype)      # stays (S, B, E2): no transpose
    mask_f = mask.astype(jnp.float32)

    grid_spec = pltpu.PrefetchScalarGridSpec(
        num_scalar_prefetch=0,
        grid=(nb, ns),
        in_specs=[
            pl.BlockSpec((tb, D), lambda i, j: (i, 0)),            # hidden
            pl.BlockSpec((ts, tb, E2), lambda i, j: (j, i, 0)),    # encoder (S,B,E2)
            pl.BlockSpec((tb, S), lambda i, j: (i, 0)),            # mask (full row)
            pl.BlockSpec((D, D), lambda i, j: (0, 0)),             # Wh
            pl.BlockSpec((E2, D), lambda i, j: (0, 0)),            # We
            pl.BlockSpec((1, D), lambda i, j: (0, 0)),             # bias
            pl.BlockSpec((1, D), lambda i, j: (0, 0)),             # v
        ],
        out_specs=pl.BlockSpec((tb, S), lambda i, j: (i, 0)),      # resident across j
        scratch_shapes=[
            pltpu.VMEM((tb, D), jnp.float32),                      # hidden proj + bias
            pltpu.VMEM((S, tb), jnp.float32),                      # raw scores stash
        ],
    )

    return pl.pallas_call(
        _attention_kernel,
        out_shape=jax.ShapeDtypeStruct((B, S), jnp.float32),
        grid_spec=grid_spec,
        compiler_params=pltpu.CompilerParams(
            dimension_semantics=("parallel", "arbitrary"),
            vmem_limit_bytes=vmem_limit,
        ),
    )(hidden_c, enc_c, mask_f, wh, we, b2, v_row)


def attention_forward(hidden, encoder_outputs, mask, w_attn, b_attn, w_v,
                      *, matmul_dtype=jnp.bfloat16):
    """
    hidden:          (B, dec_hid)                 float
    encoder_outputs: (src_len, B, 2*enc_hid)      float  (seq-major, as in PyTorch)
    mask:            (B, src_len)                 0/1
    w_attn:          (dec_hid, 2*enc_hid+dec_hid) nn.Linear weight layout
    b_attn:          (dec_hid,)
    w_v:             (1, dec_hid)                 nn.Linear(dec_hid, 1, bias=False)
    returns:         (B, src_len) float32, rows sum to 1
    """
    S = encoder_outputs.shape[0]
    s_pad = 0
    # Keep the S tile bounded for long, non-128-divisible sequences: pad once in
    # HBM; padded columns are masked out (-1e10 -> exp == 0) and sliced off.
    if S > 256 and S % 128 != 0:
        s_pad = (-S) % 128
        encoder_outputs = jnp.pad(encoder_outputs, ((0, s_pad), (0, 0), (0, 0)))
        mask = jnp.pad(mask, ((0, 0), (0, s_pad)))
    out = _attention_pallas(hidden, encoder_outputs, mask, w_attn, b_attn, w_v,
                            matmul_dtype)
    if s_pad:
        out = out[:, :S]
    return out


def attention_reference(hidden, encoder_outputs, mask, w_attn, b_attn, w_v,
                        matmul_dtype=jnp.float32):
    """Pure-JAX reference matching the PyTorch module (optionally with the same
    bf16 input rounding as the kernel's matmul path)."""
    S, B, _ = encoder_outputs.shape
    D = hidden.shape[1]
    hid_rep = jnp.repeat(hidden[:, None, :], S, axis=1)            # (B, S, D)
    enc = jnp.transpose(encoder_outputs, (1, 0, 2))                # (B, S, E2)
    cat = jnp.concatenate([hid_rep, enc], axis=2)                  # (B, S, D+E2)
    proj = jnp.dot(cat.astype(matmul_dtype), w_attn.T.astype(matmul_dtype),
                   preferred_element_type=jnp.float32)
    energy = jnp.tanh(proj + b_attn.astype(jnp.float32))           # (B, S, D)
    att = jnp.sum(energy * w_v.reshape(1, 1, D).astype(jnp.float32), axis=-1)
    att = jnp.where(mask == 0, -10000000000.0, att)
    return jax.nn.softmax(att, axis=1)


if __name__ == "__main__":
    # ---- small test (module-consistent shapes) ----
    enc_hid_dim = 16
    dec_hid_dim = 32
    batch = 2
    src_len = 8

    key = jax.random.PRNGKey(0)
    k1, k2, k3, k4, k5, k6 = jax.random.split(key, 6)

    hidden = jax.random.normal(k1, (batch, dec_hid_dim), dtype=jnp.float32)
    encoder_outputs = jax.random.normal(
        k2, (src_len, batch, enc_hid_dim * 2), dtype=jnp.float32)
    mask = (jax.random.uniform(k3, (batch, src_len)) > 0.3).astype(jnp.float32)
    mask = mask.at[:, 0].set(1.0)   # at least one valid position per row

    in_feat = enc_hid_dim * 2 + dec_hid_dim
    w_attn = jax.random.normal(k4, (dec_hid_dim, in_feat), dtype=jnp.float32) * 0.1
    b_attn = jax.random.normal(k5, (dec_hid_dim,), dtype=jnp.float32) * 0.1
    w_v = jax.random.normal(k6, (1, dec_hid_dim), dtype=jnp.float32) * 0.1

    # Exact-semantics check on the f32 path.
    out_f32 = jax.block_until_ready(
        attention_forward(hidden, encoder_outputs, mask, w_attn, b_attn, w_v,
                          matmul_dtype=jnp.float32))
    ref_f32 = attention_reference(hidden, encoder_outputs, mask, w_attn, b_attn, w_v)
    assert out_f32.shape == (batch, src_len)
    assert jnp.allclose(out_f32, ref_f32, atol=1e-5, rtol=1e-5), "f32 mismatch (small)"
    assert jnp.allclose(jnp.sum(out_f32, axis=1), 1.0, atol=1e-5)

    # Default path (bf16 request; tiny batch falls back to f32 internally).
    out_def = jax.block_until_ready(
        attention_forward(hidden, encoder_outputs, mask, w_attn, b_attn, w_v))
    assert out_def.shape == (batch, src_len)
    assert jnp.allclose(jnp.sum(out_def, axis=1), 1.0, atol=1e-4)
    assert jnp.allclose(out_def, ref_f32, atol=2e-2, rtol=2e-2)

    # ---- larger test exercising the tiled grid (batch tiles x src_len tiles) ----
    B2, S2, E_h, D2 = 16, 1024, 64, 128
    kk = jax.random.split(jax.random.PRNGKey(1), 6)
    hidden2 = jax.random.normal(kk[0], (B2, D2), dtype=jnp.float32)
    enc2 = jax.random.normal(kk[1], (S2, B2, 2 * E_h), dtype=jnp.float32)
    mask2 = (jax.random.uniform(kk[2], (B2, S2)) > 0.3).astype(jnp.float32)
    mask2 = mask2.at[:, 0].set(1.0)
    w_attn2 = jax.random.normal(kk[3], (D2, 2 * E_h + D2), dtype=jnp.float32) * 0.05
    b_attn2 = jax.random.normal(kk[4], (D2,), dtype=jnp.float32) * 0.05
    w_v2 = jax.random.normal(kk[5], (1, D2), dtype=jnp.float32) * 0.05

    # f32 path vs f32 reference (tight).
    out2_f32 = jax.block_until_ready(
        attention_forward(hidden2, enc2, mask2, w_attn2, b_attn2, w_v2,
                          matmul_dtype=jnp.float32))
    ref2_f32 = attention_reference(hidden2, enc2, mask2, w_attn2, b_attn2, w_v2)
    assert out2_f32.shape == (B2, S2)
    assert jnp.allclose(out2_f32, ref2_f32, atol=5e-5, rtol=1e-5), "f32 mismatch (tiled)"
    assert jnp.allclose(jnp.sum(out2_f32, axis=1), 1.0, atol=1e-4)

    # Default bf16-DMA path vs a reference using the same bf16 input rounding.
    out2_bf16 = jax.block_until_ready(
        attention_forward(hidden2, enc2, mask2, w_attn2, b_attn2, w_v2))
    ref2_bf16 = attention_reference(hidden2, enc2, mask2, w_attn2, b_attn2, w_v2,
                                    matmul_dtype=jnp.bfloat16)
    assert out2_bf16.shape == (B2, S2)
    assert jnp.allclose(out2_bf16, ref2_bf16, atol=5e-4, rtol=5e-3), "bf16 mismatch"
    assert jnp.allclose(jnp.sum(out2_bf16, axis=1), 1.0, atol=1e-4)
    assert jnp.allclose(out2_bf16, ref2_f32, atol=2e-2, rtol=2e-2)

    print("KERNEL_OK")
</pallas_src>

<mosaic_0001>
module attributes {stable_mosaic.version = 11 : i64} {
  func.func @_attention_kernel(%arg0: i32, %arg1: i32, %arg2: memref<2x32xf32, #tpu.memory_space<vmem>>, %arg3: memref<8x2x32xf32, #tpu.memory_space<vmem>>, %arg4: memref<2x8xf32, #tpu.memory_space<vmem>>, %arg5: memref<32x32xf32, #tpu.memory_space<vmem>>, %arg6: memref<32x32xf32, #tpu.memory_space<vmem>>, %arg7: memref<1x32xf32, #tpu.memory_space<vmem>>, %arg8: memref<1x32xf32, #tpu.memory_space<vmem>>, %arg9: memref<2x8xf32, #tpu.memory_space<vmem>>, %arg10: memref<2x32xf32, #tpu.memory_space<vmem>>, %arg11: memref<8x2xf32, #tpu.memory_space<vmem>>) attributes {dimension_semantics = [#tpu.dimension_semantics<parallel>, #tpu.dimension_semantics<arbitrary>], iteration_bounds = array<i64: 1, 1>, scalar_prefetch = 0 : i64, scratch_operands = 2 : i64, tpu.core_type = #tpu.core_type<tc>, window_params = [{transform_indices = @transform_0, window_bounds = array<i64: 2, 32>}, {transform_indices = @transform_1, window_bounds = array<i64: 8, 2, 32>}, {transform_indices = @transform_2, window_bounds = array<i64: 2, 8>}, {pipeline_mode = #tpu.pipeline_mode<synchronous>, transform_indices = @transform_3, window_bounds = array<i64: 32, 32>}, {pipeline_mode = #tpu.pipeline_mode<synchronous>, transform_indices = @transform_4, window_bounds = array<i64: 32, 32>}, {pipeline_mode = #tpu.pipeline_mode<synchronous>, transform_indices = @transform_5, window_bounds = array<i64: 1, 32>}, {pipeline_mode = #tpu.pipeline_mode<synchronous>, transform_indices = @transform_6, window_bounds = array<i64: 1, 32>}, {transform_indices = @transform_7, window_bounds = array<i64: 2, 8>}]} {
    %c0_i32 = arith.constant 0 : i32
    %0 = arith.cmpi eq, %arg1, %c0_i32 : i32
    %1 = arith.extui %0 : i1 to i32
    %c0_i32_0 = arith.constant 0 : i32
    %2 = arith.cmpi ne, %1, %c0_i32_0 : i32
    scf.if %2 {
      %c0_13 = arith.constant 0 : index
      %c0_14 = arith.constant 0 : index
      %25 = vector.load %arg2[%c0_13, %c0_14] : memref<2x32xf32, #tpu.memory_space<vmem>>, vector<2x32xf32>
      %c0_15 = arith.constant 0 : index
      %c0_16 = arith.constant 0 : index
      %26 = vector.load %arg5[%c0_15, %c0_16] : memref<32x32xf32, #tpu.memory_space<vmem>>, vector<32x32xf32>
      %cst_17 = arith.constant dense<0.000000e+00> : vector<2x32xf32>
      %27 = tpu.matmul %25, %26, %cst_17 {dimension_numbers = #tpu.dot_dimension_numbers<[1], [0], [0], [1], [0, 0, 1, 1], [], []>} : vector<2x32xf32>, vector<32x32xf32>, vector<2x32xf32> -> vector<2x32xf32>
      %c0_18 = arith.constant 0 : index
      %c0_19 = arith.constant 0 : index
      %28 = vector.load %arg7[%c0_18, %c0_19] : memref<1x32xf32, #tpu.memory_space<vmem>>, vector<1x32xf32>
      %29 = vector.broadcast %28 : vector<1x32xf32> to vector<2x32xf32>
      %30 = arith.addf %27, %29 : vector<2x32xf32>
      %c0_20 = arith.constant 0 : index
      %c0_21 = arith.constant 0 : index
      %31 = vector.load %arg10[%c0_20, %c0_21] : memref<2x32xf32, #tpu.memory_space<vmem>>, vector<2x32xf32>
      tpu.vector_store %arg10[%c0_20, %c0_21], %30 {strides = array<i32>} : memref<2x32xf32, #tpu.memory_space<vmem>>, vector<2x32xf32>,
    } else {
    }
    %c0 = arith.constant 0 : index
    %c0_1 = arith.constant 0 : index
    %c0_2 = arith.constant 0 : index
    %3 = vector.load %arg3[%c0, %c0_1, %c0_2] : memref<8x2x32xf32, #tpu.memory_space<vmem>>, vector<8x2x32xf32>
    %4 = vector.shape_cast %3 : vector<8x2x32xf32> to vector<16x32xf32>
    %c0_3 = arith.constant 0 : index
    %c0_4 = arith.constant 0 : index
    %5 = vector.load %arg6[%c0_3, %c0_4] : memref<32x32xf32, #tpu.memory_space<vmem>>, vector<32x32xf32>
    %cst = arith.constant dense<0.000000e+00> : vector<16x32xf32>
    %6 = tpu.matmul %4, %5, %cst {dimension_numbers = #tpu.dot_dimension_numbers<[1], [0], [0], [1], [0, 0, 1, 1], [], []>} : vector<16x32xf32>, vector<32x32xf32>, vector<16x32xf32> -> vector<16x32xf32>
    %7 = vector.shape_cast %6 : vector<16x32xf32> to vector<8x2x32xf32>
    %c0_5 = arith.constant 0 : index
    %c0_6 = arith.constant 0 : index
    %8 = vector.load %arg10[%c0_5, %c0_6] : memref<2x32xf32, #tpu.memory_space<vmem>>, vector<2x32xf32>
    %9 = vector.shape_cast %8 : vector<2x32xf32> to vector<1x2x32xf32>
    %10 = vector.broadcast %9 : vector<1x2x32xf32> to vector<8x2x32xf32>
    %11 = arith.addf %7, %10 : vector<8x2x32xf32>
    %12 = math.tanh %11 : vector<8x2x32xf32>
    %c0_7 = arith.constant 0 : index
    %c0_8 = arith.constant 0 : index
    %13 = vector.load %arg8[%c0_7, %c0_8] : memref<1x32xf32, #tpu.memory_space<vmem>>, vector<1x32xf32>
    %14 = vector.shape_cast %13 : vector<1x32xf32> to vector<1x1x32xf32>
    %15 = vector.broadcast %14 : vector<1x1x32xf32> to vector<8x2x32xf32>
    %16 = arith.mulf %12, %15 : vector<8x2x32xf32>
    %cst_9 = arith.constant dense<0.000000e+00> : vector<8x2xf32>
    %17 = vector.multi_reduction <add>, %16, %cst_9 [2] : vector<8x2x32xf32> to vector<8x2xf32>
    %c8_i32 = arith.constant 8 : i32
    %18 = arith.muli %arg1, %c8_i32 : i32
    %19 = tpu.assume_multiple %18, 8 : i32
    %20 = arith.index_cast %19 : i32 to index
    %c0_10 = arith.constant 0 : index
    %21 = vector.load %arg11[%20, %c0_10] : memref<8x2xf32, #tpu.memory_space<vmem>>, vector<8x2xf32>
    tpu.vector_store %arg11[%20, %c0_10], %17 {strides = array<i32>} : memref<8x2xf32, #tpu.memory_space<vmem>>, vector<8x2xf32>,
    %c0_i32_11 = arith.constant 0 : i32
    %22 = arith.cmpi eq, %arg1, %c0_i32_11 : i32
    %23 = arith.extui %22 : i1 to i32
    %c0_i32_12 = arith.constant 0 : i32
    %24 = arith.cmpi ne, %23, %c0_i32_12 : i32
    scf.if %24 {
      %c0_13 = arith.constant 0 : index
      %c0_14 = arith.constant 0 : index
      %25 = vector.load %arg11[%c0_13, %c0_14] : memref<8x2xf32, #tpu.memory_space<vmem>>, vector<8x2xf32>
      %26 = tpu.transpose %25, [1, 0] : vector<8x2xf32> -> vector<2x8xf32>
      %c0_15 = arith.constant 0 : index
      %c0_16 = arith.constant 0 : index
      %27 = vector.load %arg4[%c0_15, %c0_16] : memref<2x8xf32, #tpu.memory_space<vmem>>, vector<2x8xf32>
      %cst_17 = arith.constant 0.000000e+00 : f32
      %28 = vector.broadcast %cst_17 : f32 to vector<2x8xf32>
      %29 = arith.cmpf oeq, %27, %28 : vector<2x8xf32>
      %cst_18 = arith.constant -1.000000e+10 : f32
      %30 = vector.broadcast %cst_18 : f32 to vector<2x8xf32>
      %31 = arith.select %29, %30, %26 : vector<2x8xi1>, vector<2x8xf32>
      %cst_19 = arith.constant dense<0xFF800000> : vector<2xf32>
      %32 = vector.multi_reduction <maximumf>, %31, %cst_19 [1] : vector<2x8xf32> to vector<2xf32>
      %33 = vector.shape_cast %32 : vector<2xf32> to vector<2x1xf32>
      %34 = vector.broadcast %33 : vector<2x1xf32> to vector<2x8xf32>
      %35 = arith.subf %31, %34 : vector<2x8xf32>
      %36 = math.exp %35 : vector<2x8xf32>
      %cst_20 = arith.constant dense<0.000000e+00> : vector<2xf32>
      %37 = vector.multi_reduction <add>, %36, %cst_20 [1] : vector<2x8xf32> to vector<2xf32>
      %38 = vector.shape_cast %37 : vector<2xf32> to vector<2x1xf32>
      %39 = vector.broadcast %38 : vector<2x1xf32> to vector<2x8xf32>
      %40 = arith.divf %36, %39 : vector<2x8xf32>
      %c0_21 = arith.constant 0 : index
      %c0_22 = arith.constant 0 : index
      %41 = vector.load %arg9[%c0_21, %c0_22] : memref<2x8xf32, #tpu.memory_space<vmem>>, vector<2x8xf32>
      tpu.vector_store %arg9[%c0_21, %c0_22], %40 {strides = array<i32>} : memref<2x8xf32, #tpu.memory_space<vmem>>, vector<2x8xf32>,
    } else {
    }
    return
  }
  func.func @transform_0(%arg0: i32, %arg1: i32) -> (i32, i32) {
    %c0_i32 = arith.constant 0 : i32
    %c0_i32_0 = arith.constant 0 : i32
    return %arg0, %c0_i32 : i32, i32
  }
  func.func @transform_1(%arg0: i32, %arg1: i32) -> (i32, i32, i32) {
    %c0_i32 = arith.constant 0 : i32
    %c0_i32_0 = arith.constant 0 : i32
    return %arg1, %arg0, %c0_i32 : i32, i32, i32
  }
  func.func @transform_2(%arg0: i32, %arg1: i32) -> (i32, i32) {
    %c0_i32 = arith.constant 0 : i32
    %c0_i32_0 = arith.constant 0 : i32
    return %arg0, %c0_i32 : i32, i32
  }
  func.func @transform_3(%arg0: i32, %arg1: i32) -> (i32, i32) {
    %c0_i32 = arith.constant 0 : i32
    %c0_i32_0 = arith.constant 0 : i32
    %c0_i32_1 = arith.constant 0 : i32
    return %c0_i32, %c0_i32_0 : i32, i32
  }
  func.func @transform_4(%arg0: i32, %arg1: i32) -> (i32, i32) {
    %c0_i32 = arith.constant 0 : i32
    %c0_i32_0 = arith.constant 0 : i32
    %c0_i32_1 = arith.constant 0 : i32
    return %c0_i32, %c0_i32_0 : i32, i32
  }
  func.func @transform_5(%arg0: i32, %arg1: i32) -> (i32, i32) {
    %c0_i32 = arith.constant 0 : i32
    %c0_i32_0 = arith.constant 0 : i32
    %c0_i32_1 = arith.constant 0 : i32
    return %c0_i32, %c0_i32_0 : i32, i32
  }
  func.func @transform_6(%arg0: i32, %arg1: i32) -> (i32, i32) {
    %c0_i32 = arith.constant 0 : i32
    %c0_i32_0 = arith.constant 0 : i32
    %c0_i32_1 = arith.constant 0 : i32
    return %c0_i32, %c0_i32_0 : i32, i32
  }
  func.func @transform_7(%arg0: i32, %arg1: i32) -> (i32, i32) {
    %c0_i32 = arith.constant 0 : i32
    %c0_i32_0 = arith.constant 0 : i32
    return %arg0, %c0_i32 : i32, i32
  }
}

</mosaic_0001>

<bundles_post_ra>
// kernel: tpu_custom_call.1
= control target key start
LH: loop header
LB: loop body
LE: loop exit
PB: predicated region body
PF: predicated region fallthrough
CT: control target
= control target key end

     0   :  { %12 = vsyncpa [#allocation5], 0  ;;  %s675_s0 = inlined_call_operand.hbm [shape: f32[2,32], index: 0, kind: input, shape index: {}]   ;;  %s676_s1 = inlined_call_operand.hbm [shape: f32[8,2,32], index: 1, kind: input, shape index: {}]   ;;  %s677_s2 = inlined_call_operand.hbm [shape: f32[2,8], index: 2, kind: input, shape index: {}]   ;;  %s678_s3 = inlined_call_operand.hbm [shape: f32[32,32], index: 3, kind: input, shape index: {}]   ;;  %s679_s4 = inlined_call_operand.hbm [shape: f32[32,32], index: 4, kind: input, shape index: {}]   ;;  %s680_s5 = inlined_call_operand.vmem [shape: f32[1,32], index: 5, kind: input, shape index: {}]   ;;  %s681_s6 = inlined_call_operand.vmem [shape: f32[1,32], index: 6, kind: input, shape index: {}]   ;;  %s682_s7 = inlined_call_operand.hbm [shape: f32[2,8], index: 7, kind: output, shape index: {}]  }
   0x1   :  { %13 = vsyncpa [#allocation8], 0 }
   0x2   :  { %14 = vsyncpa [#allocation11], 0  ;;  %s31_s26 = sshll.u32 %s676_s1, 4  ;;  %s32_s26 = int_to_ptr.hbm [resolvable:$true] %s31_s26 }
   0x3   :  { %15 = vsyncpa [#allocation6], 0  ;;  %s586_s27 = smov [#allocation7]   ;;  %s55_s8 = sshll.u32 %s678_s3, 4  ;;  %s56_s8 = int_to_ptr.hbm [resolvable:$true] %s55_s8 }
   0x4   :  { %s33_s28 = sshll.u32 %s586_s27, 4  ;;  %s587_s9 = smov 32   ;;  %s34_s28 = int_to_ptr.vmem [resolvable:$true] %s33_s28 }
   0x5   :  { %s588_s10 = smov 2   ;;  %s589_s11 = smov [#allocation10]  }
   0x6   :  { %39 = dma.hbm_to_vmem [thread:$0]  %s32_s26, 256, %s34_s28, [#allocation8], %s587_s9, %s587_s9, %s588_s10  }
   0x7   :  { %s57_s12 = sshll.u32 %s589_s11, 4  ;;  %s590_s13 = smov 128   ;;  %s58_s12 = int_to_ptr.vmem [resolvable:$true] %s57_s12 }
   0x8   :  { %s591_s14 = smov 8   ;;  %s21_s16 = sshll.u32 %s675_s0, 4  ;;  %s22_s16 = int_to_ptr.hbm [resolvable:$true] %s21_s16 }
   0x9   :  { %63 = dma.hbm_to_vmem [thread:$0]  %s56_s8, 512, %s58_s12, [#allocation11], %s590_s13, %s590_s13, %s591_s14  }
   0xa   :  { %s592_s17 = smov [#allocation4]   ;;  %s45_s20 = sshll.u32 %s677_s2, 4  ;;  %s46_s20 = int_to_ptr.hbm [resolvable:$true] %s45_s20 }
   0xb   :  { %s23_s18 = sshll.u32 %s592_s17, 4  ;;  %s593_s21 = smov [#allocation9]   ;;  %s24_s18 = int_to_ptr.vmem [resolvable:$true] %s23_s18 }
   0xc   :  { %26 = dma.hbm_to_vmem [thread:$0]  %s22_s16, 32, %s24_s18, [#allocation5]  }
   0xd   :  { %s47_s22 = sshll.u32 %s593_s21, 4  ;;  %s68_s25 = sshll.u32 %s679_s4, 4  ;;  %s48_s22 = int_to_ptr.vmem [resolvable:$true] %s47_s22  ;;  %s69_s25 = int_to_ptr.hbm [resolvable:$true] %s68_s25 }
   0xe   :  { %50 = dma.hbm_to_vmem [thread:$0]  %s46_s20, 32, %s48_s22, [#allocation8]  }
   0xf   :  { %s594_s0 = smov [#allocation12]  }
  0x10   :  { %s70_s26 = sshll.u32 %s594_s0, 4  ;;  %s71_s26 = int_to_ptr.vmem [resolvable:$true] %s70_s26 }
  0x11   :  { %76 = dma.hbm_to_vmem [thread:$0]  %s69_s25, 512, %s71_s26, [#allocation11], %s590_s13, %s590_s13, %s591_s14  }
  0x12   :  { %578 = dma.done.wait [#allocation5], 32  }
  0x13   :  { %579 = vsyncadd [#allocation5], 4294967264 }
  0x14   :  { %580 = dma.done.wait [#allocation8], 288  }
  0x15   :  { %581 = vsyncadd [#allocation8], 4294967008 }
  0x16   :  { %582 = dma.done.wait [#allocation11], 1024  }
  0x17   :  { %583 = vsyncadd [#allocation11], 4294966272  ;;  %v109_v0 = vld [vmem:[#allocation10 + $0x18] sm:$0xff]  ;;  %v108_v1 = vld [vmem:[#allocation10 + $0x10] sm:$0xff]  ;;  %vm114_vm0 = vcmask 261120   ;;  %vm138_vm1 = vcmask 254976  }
  0x18   :  { %v151_v2 = vld [vmem:[#allocation12 + $0x18] sm:$0xff]  ;;  %130 = vmatpush.msra.mxu0 %v109_v0  ;;  %v150_v3 = vld [vmem:[#allocation12 + $0x10] sm:$0xff]  ;;  %v107_v4 = vld [vmem:[#allocation10 + $0x8] sm:$0xff]  ;;  %vm292_vm2 = vcmask 1041409   ;;  %vm294_vm3 = vcmask 1042434   ;;  %vm296_vm4 = vcmask 1043459  }
  0x19   :  { %397 = vmatpush.msra.mxu2 %v151_v2  ;;  %v149_v5 = vld [vmem:[#allocation12 + $0x8] sm:$0xff]  ;;  %194 = vmatpush.msra.mxu1 %v151_v2  ;;  %v144_v6 = vld [vmem:[#allocation7 + $0x8] sm:$0x3]  ;;  %v145_v7 = vld [vmem:[#allocation7 + $0xa] sm:$0x3]  ;;  %vm298_vm5 = vcmask 1044484  }
  0x1a   :  { %131 = vmatpush.msra.mxu0 %v108_v1  ;;  %v146_v8 = vld [vmem:[#allocation7 + $0xc] sm:$0x3]  ;;  %v106_v9 = vld [vmem:[#allocation10] sm:$0xff]  ;;  %v147_v11 = vld [vmem:[#allocation7 + $0xe] sm:$0x3]  ;;  %v282_v1 = vlaneseq  ;;  %vm300_vm6 = vcmask 1045509  }
  0x1b   :  { %398 = vmatpush.msra.mxu2 %v150_v3  ;;  %v148_v10 = vld [vmem:[#allocation12] sm:$0xff]  ;;  %168 = vst [vmem:[#allocation1 + $0x20] ss:$4 sm:$0xff] %v144_v6  ;;  %195 = vmatpush.msra.mxu1 %v150_v3  ;;  %v105_v12 = vld [vmem:[#allocation4] sm:$0x3]  ;;  %vm302_vm7 = vcmask 1046534  }
  0x1c   :  { %132 = vmatpush.msra.mxu0 %v107_v4  ;;  %170 = vst [vmem:[#allocation1 + $0x21] ss:$4 sm:$0xff] %v145_v7  ;;  %v140_v13 = vld [vmem:[#allocation7] sm:$0x3]  ;;  %v141_v14 = vld [vmem:[#allocation7 + $0x2] sm:$0x3] }
  0x1d   :  { %399 = vmatpush.msra.mxu2 %v149_v5  ;;  %172 = vst [vmem:[#allocation1 + $0x22] ss:$4 sm:$0xff] %v146_v8  ;;  %196 = vmatpush.msra.mxu1 %v149_v5  ;;  %v142_v15 = vld [vmem:[#allocation7 + $0x4] sm:$0x3]  ;;  %v143_v16 = vld [vmem:[#allocation7 + $0x6] sm:$0x3] }
  0x1e   :  { %133 = vmatpush.msra.mxu0 %v106_v9  ;;  %174 = vst [vmem:[#allocation1 + $0x23] ss:$4 sm:$0xff] %v147_v11  ;;  %v412_v19 = vld [vmem:[%s680_s5] ss:$0 sm:$0xff]  ;;  %v283_v3 = vand.u32 127, %v282_v1  ;;  %vm304_vm8 = vcmask 1047559  }
  0x1f   :  { %400 = vmatpush.msra.mxu2 %v148_v10  ;;  %394 = vmatmul.msk.f32.vlgmr.msra.gmra.mxu0 %vm114_vm0, %v105_v12  ;;  %160 = vst [vmem:[#allocation1] ss:$4 sm:$0xff] %v140_v13  ;;  %v413_v34 = vld [vmem:[%s681_s6] ss:$0 sm:$0xff]  ;;  %vm308_vm9 = vcmask 15360   ;;  %vm349_vm11 = vcmask 58368  }
  0x20   :  { %197 = vmatpush.msra.mxu1 %v148_v10  ;;  %162 = vst [vmem:[#allocation1 + $0x1] ss:$4 sm:$0xff] %v141_v14  ;;  %s595_s6 = smov [#allocation13]   ;;  %s382_s8 = sshll.u32 %s682_s7, 4  ;;  %s383_s8 = int_to_ptr.hbm [resolvable:$true] %s382_s8 }
  0x21   :  { %164 = vst [vmem:[#allocation1 + $0x2] ss:$4 sm:$0xff] %v142_v15  ;;  %s380_s28 = sshll.u32 %s595_s6, 4  ;;  %s381_s28 = int_to_ptr.vmem [resolvable:$true] %s380_s28 }
  0x22   :  { %166 = vst [vmem:[#allocation1 + $0x3] ss:$4 sm:$0xff] %v143_v16 }
  0x25   :  { %v176_v17 = vld.sshfl [vmem:[#allocation1 + $0x20] sm:$0xff pattern:$0x73625140] }
  0x26   :  { %396 = vmatmul.msk.f32.vlgmr.msra.gmra.mxu2 %vm114_vm0, %v176_v17 }
  0x29   :  { %v175_v18 = vld.sshfl [vmem:[#allocation1] sm:$0xff pattern:$0x73625140] }
  0x2a   :  { %395 = vmatmul.msk.f32.vlgmr.msra.gmra.mxu1 %vm114_vm0, %v175_v18 }
  0x9c   :  { %v135_v20 = vpop.f32.mrf.mxu0 }
  0x9d   :  { %v136_v21 = vadd.f32 %v412_v19, %v135_v20 }
  0x9f   :  { %139 = vst.msk [vmem:[#allocation2] sm:$0x3] %vm138_vm1, %v136_v21 }
  0xa6   :  { %v219_v22 = vld [vmem:[#allocation2] sm:$0x3] }
  0xa7   :  { %v199_v23 = vpop.f32.mrf.mxu1 }
  0xa8   :  { %v207_v24 = vrot.slane %v199_v23, 2  ;;  %v208_v25 = vrot.slane %v199_v23, 4  ;;  %v220_v26 = vadd.f32 %v219_v22, %v199_v23  ;;  %v209_v27 = vrot.slane %v199_v23, 6 }
  0xa9   :  { %v202_v28 = vpop.f32.mrf.mxu2 }
  0xaa   :  { %v221_v29 = vadd.f32 %v219_v22, %v207_v24  ;;  %v222_v30 = vadd.f32 %v219_v22, %v208_v25  ;;  %414 = vtanh.f32 %v220_v26  ;;  %v210_v31 = vrot.slane %v202_v28, 2  ;;  %v346_v26 = vld [vmem:[#allocation9] sm:$0x3] }
  0xab   :  { %v224_v32 = vadd.f32 %v219_v22, %v202_v28  ;;  %v223_v33 = vadd.f32 %v219_v22, %v209_v27  ;;  %v211_v35 = vrot.slane %v202_v28, 4  ;;  %v212_v38 = vrot.slane %v202_v28, 6 }
  0xac   :  { %416 = vtanh.f32 %v222_v30  ;;  %v225_v36 = vadd.f32 %v219_v22, %v210_v31  ;;  %vm347_vm10 = vcmp.eq.f32.partialorder %v346_v26, 0.0 }
  0xad   :  { %418 = vtanh.f32 %v221_v29  ;;  %v226_v40 = vadd.f32 %v219_v22, %v211_v35  ;;  %v227_v46 = vadd.f32 %v219_v22, %v212_v38 }
  0xae   :  { %420 = vtanh.f32 %v224_v32 }
  0xaf   :  { %422 = vtanh.f32 %v223_v33 }
  0xb0   :  { %v415_v37 = vpop.eup %414  ;;  %424 = vtanh.f32 %v225_v36 }
  0xb1   :  { %v240_v39 = vmul.f32 %v415_v37, %v413_v34  ;;  %426 = vtanh.f32 %v226_v40 }
  0xb2   :  { %v417_v41 = vpop.eup %416  ;;  %428 = vtanh.f32 %v227_v46 }
  0xb3   :  { %v249_v42 = vsel %vm138_vm1, %v240_v39, 0.0  ;;  %v419_v43 = vpop.eup %418  ;;  %v242_v44 = vmul.f32 %v417_v41, %v413_v34 }
  0xb4   :  { %250 = vadd.xlane.f32.xlu0 %v249_v42  ;;  %v421_v45 = vpop.eup %420  ;;  %v241_v50 = vmul.f32 %v419_v43, %v413_v34 }
  0xb5   :  { %v244_v47 = vmul.f32 %v421_v45, %v413_v34  ;;  %v255_v48 = vsel %vm138_vm1, %v242_v44, 0.0  ;;  %v423_v49 = vpop.eup %422 }
  0xb6   :  { %256 = vadd.xlane.f32.xlu1 %v255_v48  ;;  %v425_v52 = vpop.eup %424  ;;  %v243_v53 = vmul.f32 %v423_v49, %v413_v34  ;;  %v252_v54 = vsel %vm138_vm1, %v241_v50, 0.0 }
  0xb7   :  { %v261_v51 = vsel %vm138_vm1, %v244_v47, 0.0  ;;  %v427_v55 = vpop.eup %426  ;;  %v245_v56 = vmul.f32 %v425_v52, %v413_v34 }
  0xb8   :  { %262 = vadd.xlane.f32.xlu2 %v261_v51  ;;  %v258_v57 = vsel %vm138_vm1, %v243_v53, 0.0  ;;  %v429_v58 = vpop.eup %428  ;;  %v246_v59 = vmul.f32 %v427_v55, %v413_v34 }
  0xb9   :  { %v264_v60 = vsel %vm138_vm1, %v245_v56, 0.0  ;;  %v247_v61 = vmul.f32 %v429_v58, %v413_v34 }
  0xba   :  { %v267_v62 = vsel %vm138_vm1, %v246_v59, 0.0 }
  0xbb   :  { %v270_v63 = vsel %vm138_vm1, %v247_v61, 0.0 }
  0xbc   :  { %253 = vadd.xlane.f32.xlu0 %v252_v54 }
  0xbe   :  { %259 = vadd.xlane.f32.xlu1 %v258_v57 }
  0xc0   :  { %265 = vadd.xlane.f32.xlu2 %v264_v60 }
  0xc4   :  { %268 = vadd.xlane.f32.xlu0 %v267_v62 }
  0xc6   :  { %271 = vadd.xlane.f32.xlu1 %v270_v63 }
 0x127   :  { %v251_v0 = vpop.xlane.xlu0 %250 }
 0x128   :  { %v284_v6 = vperm.slane %v251_v0, %v283_v3 }
 0x129   :  { %v257_v2 = vpop.xlane.xlu1 %256 }
 0x12a   :  { %v286_v8 = vperm.slane %v257_v2, %v283_v3 }
 0x12b   :  { %v263_v4 = vpop.xlane.xlu2 %262 }
 0x12c   :  { %v288_v13 = vperm.slane %v263_v4, %v283_v3 }
 0x12f   :  { %v254_v5 = vpop.xlane.xlu0 %253 }
 0x130   :  { %v285_v7 = vperm.slane %v254_v5, %v283_v3 }
 0x131   :  { %v260_v9 = vpop.xlane.xlu1 %259 }
 0x132   :  { %v293_v10 = vsel %vm292_vm2, %v285_v7, %v284_v6  ;;  %v287_v11 = vperm.slane %v260_v9, %v283_v3 }
 0x133   :  { %v295_v12 = vsel %vm294_vm3, %v286_v8, %v293_v10  ;;  %v266_v14 = vpop.xlane.xlu2 %265 }
 0x134   :  { %v297_v15 = vsel %vm296_vm4, %v287_v11, %v295_v12  ;;  %v289_v17 = vperm.slane %v266_v14, %v283_v3 }
 0x135   :  { %v299_v16 = vsel %vm298_vm5, %v288_v13, %v297_v15 }
 0x136   :  { %v301_v20 = vsel %vm300_vm6, %v289_v17, %v299_v16 }
 0x137   :  { %v269_v18 = vpop.xlane.xlu0 %268 }
 0x138   :  { %v290_v19 = vperm.slane %v269_v18, %v283_v3 }
 0x139   :  { %v272_v21 = vpop.xlane.xlu1 %271 }
 0x13a   :  { %v303_v22 = vsel %vm302_vm7, %v290_v19, %v301_v20  ;;  %v291_v23 = vperm.slane %v272_v21, %v283_v3 }
 0x13c   :  { %v305_v24 = vsel %vm304_vm8, %v291_v23, %v303_v22 }
 0x13d   :  { %309 = vst.msk [vmem:[#allocation3] sm:$0xff] %vm308_vm9, %v305_v24 }
 0x144   :  { %v313_v25 = vld [vmem:[#allocation3] sm:$0xff] }
 0x145   :  { %314 = vxpose.xlu2.b32.start.end [1/1] (short) (narrow) %v313_v25, 8 }
 0x1de   :  { %v330_v27 = vpop.trf.xlu2 }
 0x1df   :  { %v348_v28 = vsel %vm347_vm10, -1e+10, %v330_v27 }
 0x1e0   :  { %v350_v29 = vsel %vm349_vm11, %v348_v28, -inf }
 0x1e1   :  { %351 = vmax.xlane.f32.xlu0 %v350_v29 }
 0x254   :  { %v352_v30 = vpop.xlane.xlu0 %351 }
 0x255   :  { %v353_v31 = vsub.f32 %v348_v28, %v352_v30 }
 0x257   :  { %v354_v32 = vmul.f32 1.442695, %v353_v31 }
 0x259   :  { %430 = vpow2.f32 %v354_v32 }
 0x25f   :  { %v431_v33 = vpop.eup %430 }
 0x260   :  { %v356_v34 = vsel %vm349_vm11, %v431_v33, 0.0 }
 0x261   :  { %357 = vadd.xlane.f32.xlu1 %v356_v34 }
 0x2d4   :  { %v358_v35 = vpop.xlane.xlu1 %357 }
 0x2d5   :  { %432 = vrcp.f32 %v358_v35  ;;  %v370_v39 = vand.u32 2147483648, %v358_v35  ;;  %v368_v41 = vand.u32 2147483647, %v358_v35  ;;  %vm364_vm13 = vweird.f32 %v358_v35 }
 0x2d7   :  { %v371_v43 = vor.u32 1.1754944e-38, %v370_v39  ;;  %vm369_vm15 = vcmp.eq.f32.partialorder %v368_v41, 8.507059e+37 }
 0x2db   :  { %v433_v36 = vpop.eup %432 }
 0x2dc   :  { %v360_v37 = vmul.f32 %v433_v36, %v358_v35  ;;  %vm365_vm12 = vweird.f32 %v433_v36 }
 0x2dd   :  { %vm366_vm14 = vmor %vm364_vm13, %vm365_vm12 }
 0x2de   :  { %v361_v38 = vsub.f32 1.0, %v360_v37 }
 0x2e0   :  { %v362_v40 = vmul.f32 %v433_v36, %v361_v38 }
 0x2e2   :  { %v363_v42 = vadd.f32 %v433_v36, %v362_v40 }
 0x2e4   :  { %v367_v44 = vsel %vm366_vm14, %v433_v36, %v363_v42 }
 0x2e5   :  { %v372_v45 = vsel %vm369_vm15, %v371_v43, %v367_v44 }
 0x2e6   :  { %v373_v46 = vmul.f32 %v431_v33, %v372_v45 }
 0x2e8   :  { %374 = vst.msk [vmem:[#allocation13] sm:$0x3] %vm349_vm11, %v373_v46 }
 0x2e9   :  { %385 = dma.vmem_to_hbm [thread:$0]  %s381_s28, 32, %s383_s8, [#allocation6]  }
 0x2ea   :  { %584 = dma.done.wait [#allocation6], 32  }
 0x2eb   :  { %585 = vsyncadd [#allocation6], 4294967264 }
 0x2ec   :  { %390 = vsyncpa [#allocation5], 1 }
 0x2ed   :  { %391 = vsyncpa [#allocation8], 1 }
 0x2ee   :  { %392 = vsyncpa [#allocation11], 1 }
 0x2ef   :  { %393 = vsyncpa [#allocation6], 1 }

</bundles_post_ra>
